<compile_context>
chip_gen: v5e
topology: v5e:2x2
jax: 0.10.0
libtpu: 0.0.40
codegen_flags: <defaults>
</compile_context>

<pallas_src>
import jax
import jax.numpy as jnp
from jax.experimental import pallas as pl
from jax.experimental.pallas import tpu as pltpu


def _decode_box_kernel(x_ref, gs_ref, s_ref, o_ref):
    """x_ref/o_ref: (1, 4, tn); gs_ref: (2, tn) = grid*stride; s_ref: (1, tn)."""
    s = s_ref[...].astype(jnp.float32)                          # (1, tn)
    gs = gs_ref[...].astype(jnp.float32)                        # (2, tn)
    # (x + g) * s == x * s + (g * s)  -- grid*stride pre-folded in the wrapper.
    xy = x_ref[0, 0:2, :].astype(jnp.float32) * s + gs          # (2, tn)
    wh = jnp.exp(x_ref[0, 2:4, :].astype(jnp.float32)) * s      # exp on 2 rows only
    o_ref[0, 0:2, :] = xy.astype(o_ref.dtype)
    o_ref[0, 2:4, :] = wh.astype(o_ref.dtype)


def _choose_n_tile(n):
    if n <= 1024:
        return n                        # single lane-dense block (== full dim -> legal)
    # multiple of 128, capped, and >= 2 tiles so the N axis shards across cores
    half = pl.cdiv(pl.cdiv(n, 2), 128) * 128
    return min(2048, half)


@jax.jit
def decode(x, grids, expanded_strides):
    """x: (B, N, C); grids: (N, 2); expanded_strides: (N, 1). Returns decoded (B, N, C)."""
    B, N, C = x.shape
    dtype = x.dtype

    # Channel-major, lane-dense-in-N side tables (3 rows of N -> a few KB).
    gs_t = jnp.transpose(
        grids.astype(jnp.float32) * expanded_strides.astype(jnp.float32), (1, 0))  # (2, N)
    s_t = jnp.transpose(expanded_strides.astype(jnp.float32), (1, 0))              # (1, N)

    # Only the 4 box channels go through the kernel.
    # TODO(synk): in a real pipeline the detection head would emit this (B, 4, N)
    # channel-major slab directly and the re-assembly below becomes buffer donation;
    # the transposes here are demo-only layout plumbing.
    box = jnp.transpose(x[..., :4], (0, 2, 1))                  # (B, 4, N)

    tn = _choose_n_tile(N)
    grid = (B, pl.cdiv(N, tn))

    box_out = pl.pallas_call(
        _decode_box_kernel,
        out_shape=jax.ShapeDtypeStruct((B, 4, N), dtype),
        grid_spec=pltpu.PrefetchScalarGridSpec(
            num_scalar_prefetch=0,
            grid=grid,
            in_specs=[
                pl.BlockSpec((1, 4, tn), lambda b, n: (b, 0, n)),   # box (aliased in place)
                pl.BlockSpec((2, tn), lambda b, n: (0, n)),         # grid * stride
                pl.BlockSpec((1, tn), lambda b, n: (0, n)),         # stride
            ],
            out_specs=pl.BlockSpec((1, 4, tn), lambda b, n: (b, 0, n)),
        ),
        input_output_aliases={0: 0},       # in-place update of the box slab
        compiler_params=pltpu.CompilerParams(
            dimension_semantics=("parallel", "parallel")),
    )(box, gs_t, s_t)

    # Re-attach the untouched channels (pure pass-through in the reference op).
    out = jnp.concatenate([jnp.transpose(box_out, (0, 2, 1)), x[..., 4:]], axis=-1)
    return out.astype(dtype)


def make_grids_and_strides(img_size, strides, dtype=jnp.float32):
    """Replicates the meshgrid / stack / cat logic of the PyTorch forward."""
    grids, exps = [], []
    for stride in strides:
        hsize = img_size[0] // stride
        wsize = img_size[1] // stride
        iy = jnp.arange(hsize)
        ix = jnp.arange(wsize)
        yv, xv = jnp.meshgrid(iy, ix, indexing="ij")
        grid = jnp.stack((xv, yv), 2).reshape(-1, 2)                 # (h*w, 2)
        grids.append(grid)
        exps.append(jnp.full((grid.shape[0], 1), stride))
    grids = jnp.concatenate(grids, axis=0).astype(dtype)             # (N, 2)
    expanded_strides = jnp.concatenate(exps, axis=0).astype(dtype)   # (N, 1)
    return grids, expanded_strides


def reference(x, grids, expanded_strides):
    g = grids.astype(x.dtype)[None]                # (1, N, 2)
    s = expanded_strides.astype(x.dtype)[None]     # (1, N, 1)
    xy = (x[..., :2] + g) * s
    wh = jnp.exp(x[..., 2:4]) * s
    return jnp.concatenate([xy, wh, x[..., 4:]], axis=-1)


if __name__ == "__main__":
    # Small, shape-consistent example: YOLOX-WholeBody12 -> 12 classes + 5 = 17 channels.
    img_size = (64, 64)
    strides = [8, 16, 32]
    B, C = 2, 17
    N = sum((img_size[0] // s) * (img_size[1] // s) for s in strides)  # 64 + 16 + 4 = 84

    key = jax.random.PRNGKey(0)
    x = jax.random.normal(key, (B, N, C), dtype=jnp.float32)

    grids, expanded_strides = make_grids_and_strides(img_size, strides)

    out = jax.block_until_ready(decode(x, grids, expanded_strides))
    ref = reference(x, grids, expanded_strides)

    assert out.shape == x.shape and out.dtype == x.dtype
    assert jnp.allclose(out, ref, rtol=1e-6, atol=1e-5), "mismatch vs reference"

    print("KERNEL_OK")
</pallas_src>

<mosaic_0001>
module attributes {stable_mosaic.version = 11 : i64} {
  func.func @_decode_box_kernel(%arg0: i32, %arg1: i32, %arg2: memref<1x4x84xf32, #tpu.memory_space<vmem>>, %arg3: memref<2x84xf32, #tpu.memory_space<vmem>>, %arg4: memref<1x84xf32, #tpu.memory_space<vmem>>, %arg5: memref<1x4x84xf32, #tpu.memory_space<vmem>>) attributes {dimension_semantics = [#tpu.dimension_semantics<parallel>, #tpu.dimension_semantics<parallel>], iteration_bounds = array<i64: 2, 1>, scalar_prefetch = 0 : i64, scratch_operands = 0 : i64, tpu.core_type = #tpu.core_type<tc>, window_params = [{transform_indices = @transform_0, window_bounds = array<i64: 1, 4, 84>}, {transform_indices = @transform_1, window_bounds = array<i64: 2, 84>}, {transform_indices = @transform_2, window_bounds = array<i64: 1, 84>}, {transform_indices = @transform_3, window_bounds = array<i64: 1, 4, 84>}]} {
    %c0 = arith.constant 0 : index
    %c0_0 = arith.constant 0 : index
    %0 = vector.load %arg4[%c0, %c0_0] : memref<1x84xf32, #tpu.memory_space<vmem>>, vector<1x84xf32>
    %c0_1 = arith.constant 0 : index
    %c0_2 = arith.constant 0 : index
    %1 = vector.load %arg3[%c0_1, %c0_2] : memref<2x84xf32, #tpu.memory_space<vmem>>, vector<2x84xf32>
    %c0_3 = arith.constant 0 : index
    %c0_4 = arith.constant 0 : index
    %c0_5 = arith.constant 0 : index
    %2 = vector.load %arg2[%c0_3, %c0_4, %c0_5] : memref<1x4x84xf32, #tpu.memory_space<vmem>>, vector<1x2x84xf32>
    %3 = vector.shape_cast %2 : vector<1x2x84xf32> to vector<2x84xf32>
    %4 = vector.broadcast %0 : vector<1x84xf32> to vector<2x84xf32>
    %5 = arith.mulf %3, %4 : vector<2x84xf32>
    %6 = arith.addf %5, %1 : vector<2x84xf32>
    %c0_6 = arith.constant 0 : index
    %c2 = arith.constant 2 : index
    %c0_7 = arith.constant 0 : index
    %7 = vector.load %arg2[%c0_6, %c2, %c0_7] : memref<1x4x84xf32, #tpu.memory_space<vmem>>, vector<1x2x84xf32>
    %8 = vector.shape_cast %7 : vector<1x2x84xf32> to vector<2x84xf32>
    %9 = math.exp %8 : vector<2x84xf32>
    %10 = vector.broadcast %0 : vector<1x84xf32> to vector<2x84xf32>
    %11 = arith.mulf %9, %10 : vector<2x84xf32>
    %c0_8 = arith.constant 0 : index
    %c0_9 = arith.constant 0 : index
    %c0_10 = arith.constant 0 : index
    %12 = vector.load %arg5[%c0_8, %c0_9, %c0_10] : memref<1x4x84xf32, #tpu.memory_space<vmem>>, vector<1x2x84xf32>
    %13 = vector.shape_cast %12 : vector<1x2x84xf32> to vector<2x84xf32>
    %14 = vector.shape_cast %6 : vector<2x84xf32> to vector<1x2x84xf32>
    tpu.vector_store %arg5[%c0_8, %c0_9, %c0_10], %14 {strides = array<i32>} : memref<1x4x84xf32, #tpu.memory_space<vmem>>, vector<1x2x84xf32>,
    %c0_11 = arith.constant 0 : index
    %c2_12 = arith.constant 2 : index
    %c0_13 = arith.constant 0 : index
    %15 = vector.load %arg5[%c0_11, %c2_12, %c0_13] : memref<1x4x84xf32, #tpu.memory_space<vmem>>, vector<1x2x84xf32>
    %16 = vector.shape_cast %15 : vector<1x2x84xf32> to vector<2x84xf32>
    %17 = vector.shape_cast %11 : vector<2x84xf32> to vector<1x2x84xf32>
    tpu.vector_store %arg5[%c0_11, %c2_12, %c0_13], %17 {strides = array<i32>} : memref<1x4x84xf32, #tpu.memory_space<vmem>>, vector<1x2x84xf32>,
    return
  }
  func.func @transform_0(%arg0: i32, %arg1: i32) -> (i32, i32, i32) {
    %c0_i32 = arith.constant 0 : i32
    %c0_i32_0 = arith.constant 0 : i32
    return %arg0, %c0_i32, %arg1 : i32, i32, i32
  }
  func.func @transform_1(%arg0: i32, %arg1: i32) -> (i32, i32) {
    %c0_i32 = arith.constant 0 : i32
    %c0_i32_0 = arith.constant 0 : i32
    return %c0_i32, %arg1 : i32, i32
  }
  func.func @transform_2(%arg0: i32, %arg1: i32) -> (i32, i32) {
    %c0_i32 = arith.constant 0 : i32
    %c0_i32_0 = arith.constant 0 : i32
    return %c0_i32, %arg1 : i32, i32
  }
  func.func @transform_3(%arg0: i32, %arg1: i32) -> (i32, i32, i32) {
    %c0_i32 = arith.constant 0 : i32
    %c0_i32_0 = arith.constant 0 : i32
    return %arg0, %c0_i32, %arg1 : i32, i32, i32
  }
}

</mosaic_0001>

<bundles_post_ra>
// kernel: decode.1
= control target key start
LH: loop header
LB: loop body
LE: loop exit
PB: predicated region body
PF: predicated region fallthrough
CT: control target
= control target key end

     0   :  { %s427_s12 = smov 0   ;;  %s429_s13 = smov 0   ;;  %s463_s0 = inlined_call_operand.vmem [shape: f32[2,4,84], index: 0, kind: input, shape index: {}, may-alias: {0,3}]   ;;  %s464_s1 = inlined_call_operand.vmem [shape: f32[2,84], index: 1, kind: input, shape index: {}]   ;;  %s465_s2 = inlined_call_operand.vmem [shape: f32[1,84], index: 2, kind: input, shape index: {}]   ;;  %s466_s3 = inlined_call_operand.vmem [shape: f32[2,4,84], index: 3, kind: output, shape index: {}, may-alias: {0,3}]  }
   0x1   :  { %s431_s14 = smov 0  }
   0x2 LB: > { %s25_s15 = sadd.s32 1, %s401_s13  ;;  %p351_p0 = scmp.ge.s32.totalorder %s405_s14, 1  ;;  %s405_s14 = sphi %s431_s14, %s13_s14   ;;  %s401_s13 = sphi %s429_s13, %s468_s13   ;;  %s397_s12 = sphi %s427_s12, %s467_s12  }
   0x3   : > { %p27_p1 = scmp.ge.s32.totalorder %s25_s15, 2  ;;  %p172_p2 = scmp.lt.s32.totalorder %s405_s14, 3 }
   0x5   : > { %s470_s15 = smov (%p27_p1, %s25_s15), 0  ;;  %p173_p3 = pnand %p351_p0, %p172_p2 }
   0x6   : > { %p207_p4 = scmp.lt.s32.totalorder (!%p173_p3), %s397_s12, 1 }
   0x7   : > { %176 = sbr.rel (%p173_p3) target bundleno = 28 (0x1c), region = 32 }
   0xc   : > { %s472_s12 = smov (!%p207_p4, %s397_s12), 1  ;;  %v380_v0 = vld [vmem:[%s465_s2] ss:$0 sm:$0xff]  ;;  %vm240_vm0 = vcmask 680960  }
   0xd   : > { %s352_s18 = sshll.u32 %s472_s12, 2  ;;  %v229_v1 = vld [vmem:[%s464_s1] sm:$0x3] }
   0xe   : > { %s213_s21 = scalar_lea.vmem %s463_s0, %s352_s18  ;;  %s227_s26 = scalar_lea.vmem %s466_s3, %s352_s18 }
   0xf   : > { %v230_v2 = vld [vmem:[%s213_s21] sm:$0x3]  ;;  %v236_v3 = vld [vmem:[%s213_s21 + $0x2] sm:$0x3] }
  0x10   : > { %v234_v4 = vmul.f32 %v380_v0, %v230_v2  ;;  %v237_v5 = vmul.f32 1.442695, %v236_v3 }
  0x12   : > { %v235_v6 = vadd.f32 %v234_v4, %v229_v1  ;;  %381 = vpow2.f32 %v237_v5 }
  0x14   : > { %241 = vst.msk [vmem:[%s227_s26] sm:$0x3] %vm240_vm0, %v235_v6 }
  0x18   : > { %v382_v7 = vpop.eup %381 }
  0x19   : > { %v239_v8 = vmul.f32 %v382_v7, %v380_v0 }
  0x1b   : > { %242 = vst.msk [vmem:[%s227_s26 + $0x2] sm:$0x3] %vm240_vm0, %v239_v8 }
  0x1c PF: > { %s13_s14 = sadd.s32 1, %s405_s14   ;;  %s467_s12 = smov %s401_s13 }
  0x1d   : > { %p10_p5 = scmp.ge.s32.totalorder %s13_s14, 4   ;;  %s468_s13 = smov %s470_s15 }
  0x1f   :  { %12 = sbr.rel (!%p10_p5) target bundleno = 2 (0x2), region = 68 }

</bundles_post_ra>
